<compile_context>
chip_gen: v6e
topology: v6e:2x2x1
jax: 0.10.0
libtpu: 0.0.40
codegen_flags: <defaults>
</compile_context>

<pallas_src>
import jax
import jax.numpy as jnp
from jax.experimental import pallas as pl
from jax.experimental.pallas import tpu as pltpu


def fused_model_kernel(x_ref, p_ref, out_ref):
    """x_ref: (1,10) flattened input.
       p_ref: (3,10) packed params:
         row 0         -> A.reshape(10)   (folded linear_1+conv_1 weight)
         row 1, 0:5    -> w2 (linear_1_1 weight row)
         row 1, 5      -> c0 (folded conv bias:  sum(b1*wc)+bc)
         row 2, 0:5    -> b2 (linear_1_1 bias)
       out_ref: (1,5)."""
    # Folded linear_1 + conv_1: elementwise multiply (VPU) + one lane reduce (XLU).
    xa = x_ref[...] * p_ref[0:1, :]                       # (1,10)
    s = jnp.sum(xa, axis=-1, keepdims=True)               # (1,1)
    # conv bias + ReLU.
    s = jnp.maximum(s + p_ref[1:2, 5:6], 0.0)             # (1,1)
    # linear_1_1: scalar * weights + bias.
    out_ref[...] = s * p_ref[1:2, 0:5] + p_ref[2:3, 0:5]  # (1,5)


def model_forward(x, w1, b1, wc, bc, w2, b2):
    """x: (2,5) f32.  Parameters follow PyTorch layer shapes, pre-flattened:
         w1: (5,2)  (= linear_1.weight.T),  b1: (1,2)
         wc: (2,2)  (= conv_1.weight[0,0]), bc: (1,1)
         w2: (1,5)  (= linear_1_1.weight.T),b2: (1,5)
    Returns (1,5) f32."""
    # ---- trace-time constant folding (tiny XLA ops, outside the kernel) ----
    A = wc @ w1.T                                 # (2,5): A[i,k] = sum_j wc[i,j]*w1[k,j]
    c0 = jnp.sum(b1 * wc) + bc[0, 0]              # scalar folded conv bias
    params = jnp.zeros((3, 10), jnp.float32)
    params = params.at[0, :].set(A.reshape(10))
    params = params.at[1, 0:5].set(w2[0])
    params = params.at[1, 5].set(c0)
    params = params.at[2, 0:5].set(b2[0])
    x_flat = x.reshape(1, 10)

    vmem = pl.BlockSpec(memory_space=pltpu.MemorySpace.VMEM)
    return pl.pallas_call(
        fused_model_kernel,
        out_shape=jax.ShapeDtypeStruct((1, 5), jnp.float32),
        in_specs=[vmem, vmem],
        out_specs=vmem,
    )(x_flat, params)


def reference_forward(x, w1, b1, wc, bc, w2, b2):
    """Straightforward (unfused) reference of the original op sequence."""
    v1 = x @ w1 + b1                                  # (2,2)  linear_1
    v3 = jnp.sum(v1 * wc).reshape(1, 1) + bc          # (1,1)  conv_1 (full-extent valid conv)
    v4 = jnp.maximum(v3, 0.0)                         # (1,1)  relu
    return v4 * w2 + b2                               # (1,5)  linear_1_1


if __name__ == "__main__":
    key = jax.random.PRNGKey(0)
    kx, k1, k2, k3, k4, k5, k6 = jax.random.split(key, 7)

    # input: (2,5) so that reshape(1,1,2,2) of the (2,2) linear output is valid
    x = jax.random.normal(kx, (2, 5), dtype=jnp.float32)

    # linear_1: Linear(5,2) -> weight (2,5), bias (2,)   (uniform like PyTorch)
    lim1 = 1.0 / jnp.sqrt(5.0)
    w1 = jax.random.uniform(k1, (2, 5), jnp.float32, -lim1, lim1).T      # (5,2)
    b1 = jax.random.uniform(k2, (1, 2), jnp.float32, -lim1, lim1)

    # conv_1: Conv2d(1,1,2) -> weight (1,1,2,2), bias (1,)
    limc = 1.0 / jnp.sqrt(1.0 * 2 * 2)
    wc = jax.random.uniform(k3, (2, 2), jnp.float32, -limc, limc)        # (2,2)
    bc = jax.random.uniform(k4, (1, 1), jnp.float32, -limc, limc)

    # linear_1_1: Linear(1,5) -> weight (5,1), bias (5,)
    lim2 = 1.0
    w2 = jax.random.uniform(k5, (5, 1), jnp.float32, -lim2, lim2).T      # (1,5)
    b2 = jax.random.uniform(k6, (1, 5), jnp.float32, -lim2, lim2)

    out = model_forward(x, w1, b1, wc, bc, w2, b2)
    out = jax.block_until_ready(out)

    ref = reference_forward(x, w1, b1, wc, bc, w2, b2)
    assert out.shape == (1, 5), out.shape
    assert ref.shape == (1, 5), ref.shape
    assert jnp.allclose(out, ref, atol=1e-5, rtol=1e-5), (out, ref)

    print("KERNEL_OK")
</pallas_src>

<mosaic_0001>
module attributes {stable_mosaic.version = 11 : i64} {
  func.func @fused_model_kernel(%arg0: memref<1x10xf32, #tpu.memory_space<vmem>>, %arg1: memref<3x10xf32, #tpu.memory_space<vmem>>, %arg2: memref<1x5xf32, #tpu.memory_space<vmem>>) attributes {dimension_semantics = [], scalar_prefetch = 0 : i64, scratch_operands = 0 : i64, tpu.core_type = #tpu.core_type<tc>} {
    %c0 = arith.constant 0 : index
    %c0_0 = arith.constant 0 : index
    %0 = vector.load %arg0[%c0, %c0_0] : memref<1x10xf32, #tpu.memory_space<vmem>>, vector<1x10xf32>
    %c0_1 = arith.constant 0 : index
    %c0_2 = arith.constant 0 : index
    %1 = vector.load %arg1[%c0_1, %c0_2] : memref<3x10xf32, #tpu.memory_space<vmem>>, vector<1x10xf32>
    %2 = arith.mulf %0, %1 : vector<1x10xf32>
    %cst = arith.constant dense<0.000000e+00> : vector<1xf32>
    %3 = vector.multi_reduction <add>, %2, %cst [1] : vector<1x10xf32> to vector<1xf32>
    %4 = vector.shape_cast %3 : vector<1xf32> to vector<1x1xf32>
    %c1 = arith.constant 1 : index
    %c5 = arith.constant 5 : index
    %5 = vector.load %arg1[%c1, %c5] : memref<3x10xf32, #tpu.memory_space<vmem>>, vector<1x1xf32>
    %6 = arith.addf %4, %5 : vector<1x1xf32>
    %cst_3 = arith.constant 0.000000e+00 : f32
    %7 = vector.broadcast %cst_3 : f32 to vector<1x1xf32>
    %8 = arith.maximumf %6, %7 : vector<1x1xf32>
    %c1_4 = arith.constant 1 : index
    %c0_5 = arith.constant 0 : index
    %9 = vector.load %arg1[%c1_4, %c0_5] : memref<3x10xf32, #tpu.memory_space<vmem>>, vector<1x5xf32>
    %10 = vector.broadcast %8 : vector<1x1xf32> to vector<1x5xf32>
    %11 = arith.mulf %10, %9 : vector<1x5xf32>
    %c2 = arith.constant 2 : index
    %c0_6 = arith.constant 0 : index
    %12 = vector.load %arg1[%c2, %c0_6] : memref<3x10xf32, #tpu.memory_space<vmem>>, vector<1x5xf32>
    %13 = arith.addf %11, %12 : vector<1x5xf32>
    %c0_7 = arith.constant 0 : index
    %c0_8 = arith.constant 0 : index
    %14 = vector.load %arg2[%c0_7, %c0_8] : memref<1x5xf32, #tpu.memory_space<vmem>>, vector<1x5xf32>
    tpu.vector_store %arg2[%c0_7, %c0_8], %13 {strides = array<i32>} : memref<1x5xf32, #tpu.memory_space<vmem>>, vector<1x5xf32>,
    return
  }
}

</mosaic_0001>

<bundles_post_ra>
// kernel: tpu_custom_call.1
= control target key start
LH: loop header
LB: loop body
LE: loop exit
PB: predicated region body
PF: predicated region fallthrough
CT: control target
= control target key end

     0   :  { %7 = vsyncpa [#allocation3], 0  ;;  %s171_s0 = inlined_call_operand.hbm [shape: f32[1,10], index: 0, kind: input, shape index: {}]   ;;  %s172_s1 = inlined_call_operand.hbm [shape: f32[3,10], index: 1, kind: input, shape index: {}]   ;;  %s173_s2 = inlined_call_operand.hbm [shape: f32[1,5], index: 2, kind: output, shape index: {}]  }
   0x1   :  { %8 = vsyncpa [#allocation6], 0 }
   0x2   :  { %9 = vsyncpa [#allocation4], 0  ;;  %s143_s9 = smov [#allocation2]   ;;  %s144_s11 = smov [#allocation5]  }
   0x3   :  { %s16_s10 = sshll.u32 %s143_s9, 4  ;;  %s26_s12 = sshll.u32 %s144_s11, 4  ;;  %s17_s10 = int_to_ptr.vmem [resolvable:$true] %s16_s10  ;;  %s27_s12 = int_to_ptr.vmem [resolvable:$true] %s26_s12 }
   0x4   :  { %s85_s13 = scalar_lea.vmem %s17_s10, 16  ;;  %s89_s14 = scalar_lea.vmem %s17_s10, 32 }
   0x5   :  { %p86_p0 = scmp.ne.s32.totalorder %s17_s10, %s85_s13  ;;  %p90_p1 = scmp.lt.s32.totalorder %s17_s10, %s17_s10 }
   0x6   :  { %p91_p2 = scmp.lt.s32.totalorder %s89_s14, %s85_s13 }
   0x8   :  { %p92_p3 = por %p91_p2, %p90_p1 }
   0xa   :  { %p93_p4 = pnand %p92_p3, %p86_p0 }
   0xc   :  { %96 = shalt.err (!%p93_p4)
}
   0xd   :  { %19 = dma.hbm_to_vmem [thread:$0]  %s171_s0, 16, %s17_s10, [#allocation3]  }
   0xe   :  { %s105_s17 = scalar_lea.vmem %s27_s12, 64  ;;  %p110_p6 = scmp.lt.s32.totalorder %s27_s12, %s27_s12 }
   0xf   :  { %p106_p5 = scmp.ne.s32.totalorder %s27_s12, %s105_s17  ;;  %p111_p7 = scmp.lt.s32.totalorder %s105_s17, %s105_s17 }
  0x11   :  { %p112_p8 = por %p111_p7, %p110_p6 }
  0x13   :  { %p113_p9 = pnand %p112_p8, %p106_p5 }
  0x15   :  { %116 = shalt.err (!%p113_p9)
}
  0x16   :  { %29 = dma.hbm_to_vmem [thread:$0]  %s172_s1, 64, %s27_s12, [#allocation6]  }
  0x17   :  { %137 = dma.done.wait [#allocation3], 16  }
  0x18   :  { %138 = vsyncadd [#allocation3], 4294967280 }
  0x19   :  { %139 = dma.done.wait [#allocation6], 64  }
  0x1a   :  { %140 = vsyncadd [#allocation6], 4294967232  ;;  %v36_v0 = vld [vmem:[#allocation2] sm:$0x1]  ;;  %v37_v1 = vld [vmem:[#allocation5] sm:$0x1] }
  0x1b   :  { %vm39_vm0 = vcmask 73728   ;;  %v38_v2 = vmul.f32 %v37_v1, %v36_v0  ;;  %v145_v4 = vmov 5   ;;  %v43_v5 = vld [vmem:[#allocation5 + $0x1] sm:$0x1]  ;;  %v52_v9 = vld [vmem:[#allocation5 + $0x2] sm:$0x1] }
  0x1c   :  { %76 = vset.pattern.permute.xlu0 %v145_v4  ;;  %s146_s0 = smov [#allocation7]   ;;  %vm54_vm1 = vcmask 32768  }
  0x1d   :  { %v40_v3 = vsel %vm39_vm0, %v38_v2, 0.0  ;;  %s62_s1 = sshll.u32 %s146_s0, 4  ;;  %s63_s1 = int_to_ptr.vmem [resolvable:$true] %s62_s1 }
  0x1e   :  { %41 = vadd.xlane.f32.xlu0 %v40_v3  ;;  %s117_s20 = scalar_lea.vmem %s63_s1, 16  ;;  %s121_s21 = scalar_lea.vmem %s63_s1, 32 }
  0x1f   :  { %p118_p10 = scmp.ne.s32.totalorder %s63_s1, %s117_s20  ;;  %p122_p11 = scmp.lt.s32.totalorder %s63_s1, %s63_s1 }
  0x20   :  { %p123_p12 = scmp.lt.s32.totalorder %s121_s21, %s117_s20 }
  0x22   :  { %p124_p13 = por %p123_p12, %p122_p11 }
  0x24   :  { %p125_p0 = pnand %p124_p13, %p118_p10 }
  0xa7   :  { %v42_v6 = vpop.xlane.xlu0 %41 }
  0xa8   :  { %v44_v7 = vadd.f32 %v43_v5, %v42_v6 }
  0xaa   :  { %v45_v8 = vmax.f32 %v44_v7, 0.0 }
  0xac   :  { %48 = vperm.xlu0 %76, %v45_v8  }
 0x127   :  { %v49_v10 = vpop.permute.xlu0 %48 }
 0x128   :  { %v51_v11 = vmul.f32 %v49_v10, %v43_v5 }
 0x12a   :  { %v53_v12 = vadd.f32 %v52_v9, %v51_v11 }
 0x12c   :  { %55 = vst.msk [vmem:[#allocation7] sm:$0x1] %vm54_vm1, %v53_v12 }
 0x12d   :  { %128 = shalt.err (!%p125_p0)
}
 0x12e   :  { %65 = dma.vmem_to_hbm [thread:$0]  %s63_s1, 16, %s173_s2, [#allocation4]  }
 0x12f   :  { %141 = dma.done.wait [#allocation4], 16  }
 0x130   :  { %142 = vsyncadd [#allocation4], 4294967280 }
 0x131   :  { %69 = vsyncpa [#allocation3], 1 }
 0x132   :  { %70 = vsyncpa [#allocation6], 1 }
 0x133   :  { %71 = vsyncpa [#allocation4], 1 }

</bundles_post_ra>
